<compile_context>
chip_gen: v7x
topology: tpu7x:2x2x1
jax: 0.10.0
libtpu: 0.0.40
codegen_flags: <defaults>
</compile_context>

<pallas_src>
import jax
import jax.numpy as jnp
from jax.experimental import pallas as pl
from jax.experimental.pallas import tpu as pltpu


def _motion_kernel(label0_ref, img0_ref, label_ref, back_ref,
                   w_l_ref, w_lp_ref, w_b_ref, w_p_ref, bias_ref,
                   out_ref, prev_sc, lprev_sc):
    """One time step of the recurrence for one (batch, pixel-tile)."""
    t = pl.program_id(2)

    # (Re-)initialise the recurrent state at the first step of every
    # (batch, pixel-tile): img_prev <- img[0], label_prev <- label[0].
    @pl.when(t == 0)
    def _():
        prev_sc[...] = img0_ref[0]
        lprev_sc[...] = label0_ref[0]

    label = label_ref[0, 0]      # [Cl, TP]  label[t + 1]  (streamed)
    back = back_ref[0, 0]        # [3,  TP]  back[t + 1]   (streamed)
    lprev = lprev_sc[...]        # [Cl, TP]  label[t]      (carried in VMEM)
    prev = prev_sc[...]          # [3,  TP]  fused frame   (carried in VMEM)

    # Synthetic generator: per-pixel channel mixing (1x1 conv).  Weights are
    # pre-split per input group so no sublane concatenate is needed.
    z = (jnp.dot(w_l_ref[...], label, preferred_element_type=jnp.float32)
         + jnp.dot(w_lp_ref[...], lprev, preferred_element_type=jnp.float32)
         + jnp.dot(w_b_ref[...], back, preferred_element_type=jnp.float32)
         + jnp.dot(w_p_ref[...], prev, preferred_element_type=jnp.float32)
         + bias_ref[...])                          # [4, TP]

    gen = jnp.tanh(z[0:3, :])                      # [3, TP]  (EUP)
    mask = jax.nn.sigmoid(z[3:4, :])               # [1, TP]  (EUP)
    # fuse = gen*mask + back*(1-mask), rewritten with one fewer multiply.
    fuse = back + mask * (gen - back)              # [3, TP]

    # Single 8-sublane, lane-dense output slab (one writeback block per step).
    out_ref[0, 0, 0:3, :] = gen
    out_ref[0, 0, 3:4, :] = mask
    out_ref[0, 0, 4:7, :] = fuse
    out_ref[0, 0, 7:8, :] = mask                   # padding row (ignored)

    # Carry the state forward to the next time step.
    prev_sc[...] = fuse
    lprev_sc[...] = label


def _choose_lane_tile(hw, preferred):
    for cand in (preferred, 8192, 4096, 2048, 1024, 512, 256, 128):
        if cand <= hw and hw % cand == 0:
            return cand
    return hw    # fall back to the full (possibly lane-sparse) extent


def motion_recovery_forward(img, pose, skel, back, w, b, *, lane_tile=2048):
    """img/pose/skel/back: [T, B, C, H, W] float32 (already .transpose(1, 0)).

    Returns (gen, mask, fuse), each [T-2, B, C, H, W].
    """
    T, B, _, H, W = img.shape
    assert T >= 3, "need at least 3 frames"
    HW = H * W
    n_steps = T - 2

    # label = cat([skel, pose], dim=2)  (mirrors Motion_recovery_auto.set_input)
    label = jnp.concatenate([skel, pose], axis=2)       # [T, B, Cl, H, W]
    Cl = label.shape[2]
    c_out = w.shape[0]

    # Free reshapes only (contiguous): lane axis = H*W.  No transposes.
    label_r = label.reshape(T, B, Cl, HW)
    back_r = back.reshape(T, B, 3, HW)
    img0_r = img[0].reshape(B, 3, HW)
    label0_r = label_r[0]                                # [B, Cl, HW]

    # Pre-split the 1x1-conv weight per input group; bias as a lane-broadcast
    # column.  Column order matches cat([label, label_prev, back, img_prev]).
    w_l = w[:, 0:Cl]
    w_lp = w[:, Cl:2 * Cl]
    w_b = w[:, 2 * Cl:2 * Cl + 3]
    w_p = w[:, 2 * Cl + 3:2 * Cl + 6]
    bias = b.reshape(c_out, 1)

    tp = _choose_lane_tile(HW, lane_tile)
    n_pt = HW // tp

    def run(stream_pipeline_mode):
        stream_kwargs = ({} if stream_pipeline_mode is None
                         else dict(pipeline_mode=stream_pipeline_mode))
        grid_spec = pltpu.PrefetchScalarGridSpec(
            num_scalar_prefetch=0,
            grid=(B, n_pt, n_steps),
            in_specs=[
                pl.BlockSpec((1, Cl, tp), lambda bb, p, t: (bb, 0, p)),    # label[0]
                pl.BlockSpec((1, 3, tp), lambda bb, p, t: (bb, 0, p)),     # img[0]
                pl.BlockSpec((1, 1, Cl, tp),
                             lambda bb, p, t: (t + 1, bb, 0, p),
                             **stream_kwargs),                             # label[t+1]
                pl.BlockSpec((1, 1, 3, tp),
                             lambda bb, p, t: (t + 1, bb, 0, p),
                             **stream_kwargs),                             # back[t+1]
                pl.BlockSpec((c_out, Cl), lambda bb, p, t: (0, 0)),        # w_label
                pl.BlockSpec((c_out, Cl), lambda bb, p, t: (0, 0)),        # w_label_prev
                pl.BlockSpec((c_out, 3), lambda bb, p, t: (0, 0)),         # w_back
                pl.BlockSpec((c_out, 3), lambda bb, p, t: (0, 0)),         # w_prev
                pl.BlockSpec((c_out, 1), lambda bb, p, t: (0, 0)),         # bias
            ],
            out_specs=pl.BlockSpec((1, 1, 8, tp),
                                   lambda bb, p, t: (t, bb, 0, p)),
            scratch_shapes=[
                pltpu.VMEM((3, tp), jnp.float32),    # fused-frame carry
                pltpu.VMEM((Cl, tp), jnp.float32),   # previous-label carry
            ],
        )
        return pl.pallas_call(
            _motion_kernel,
            out_shape=jax.ShapeDtypeStruct((n_steps, B, 8, HW), jnp.float32),
            grid_spec=grid_spec,
            compiler_params=pltpu.CompilerParams(
                # time carries the recurrence -> sequential; batch / pixel
                # tiles are independent -> megacore-parallel (v7x).
                dimension_semantics=("parallel", "parallel", "arbitrary"),
            ),
        )(label0_r, img0_r, label_r, back_r, w_l, w_lp, w_b, w_p, bias)

    try:
        # Triple-buffer the two streamed inputs to hide DMA issue latency
        # behind the short sequential time steps.
        packed = run(pl.Buffered(3))
    except Exception:  # pragma: no cover - fall back to default double-buffering
        packed = run(None)

    gen = packed[:, :, 0:3, :].reshape(n_steps, B, 3, H, W)
    mask = packed[:, :, 3:4, :].reshape(n_steps, B, 1, H, W)
    fuse = packed[:, :, 4:7, :].reshape(n_steps, B, 3, H, W)
    return gen, mask, fuse


def motion_recovery_ref(img, pose, skel, back, w, b):
    """Pure-JAX reference of the recurrence (mirrors the PyTorch forward)."""
    T = img.shape[0]
    label = jnp.concatenate([skel, pose], axis=2)
    img_prev = img[0]
    gens, masks, fuses = [], [], []
    for i in range(T - 2):
        x = jnp.concatenate(
            [label[i + 1], label[i], back[i + 1], img_prev], axis=1)  # [B,Cin,H,W]
        z = jnp.einsum('oc,bchw->bohw', w, x) + b.reshape(1, -1, 1, 1)
        gen = jnp.tanh(z[:, 0:3])
        m = jax.nn.sigmoid(z[:, 3:4])
        fuse = gen * m + back[i + 1] * (1.0 - m)
        img_prev = fuse
        gens.append(gen)
        masks.append(m)
        fuses.append(fuse)
    return jnp.stack(gens), jnp.stack(masks), jnp.stack(fuses)


if __name__ == "__main__":
    key = jax.random.PRNGKey(0)
    T, B, H, W = 8, 2, 16, 32          # seq, batch, spatial (H*W = 512 lanes)
    C_skel, C_pose = 3, 3              # label channels = 6
    C_in = 2 * (C_skel + C_pose) + 3 + 3   # label + label_prev + back + img_prev
    C_out = 4                          # 3 (gen) + 1 (mask)

    k1, k2, k3, k4, k5 = jax.random.split(key, 5)
    img = jax.random.uniform(k1, (T, B, 3, H, W), jnp.float32)
    pose = jax.random.uniform(k2, (T, B, C_pose, H, W), jnp.float32)
    skel = jax.random.uniform(k3, (T, B, C_skel, H, W), jnp.float32)
    back = jax.random.uniform(k4, (T, B, 3, H, W), jnp.float32)

    # Deterministic synthetic generator parameters (1x1 conv).
    # TODO(synk): the real Generator / Discriminator architectures are not in
    # the provided source; a synthetic 1x1-conv generator stands in for net_G.
    w = 0.1 * jax.random.normal(k5, (C_out, C_in), jnp.float32)
    b = jnp.zeros((C_out, 1), jnp.float32)

    # lane_tile=256 exercises the pixel-tile grid axis (2 tiles of 256 lanes).
    gen, mask, fuse = motion_recovery_forward(img, pose, skel, back, w, b,
                                              lane_tile=256)
    jax.block_until_ready((gen, mask, fuse))

    gen_r, mask_r, fuse_r = motion_recovery_ref(img, pose, skel, back, w, b)
    assert jnp.allclose(gen, gen_r, rtol=1e-5, atol=1e-5)
    assert jnp.allclose(mask, mask_r, rtol=1e-5, atol=1e-5)
    assert jnp.allclose(fuse, fuse_r, rtol=1e-5, atol=1e-5)

    print("KERNEL_OK")
</pallas_src>

<mosaic_0001>
module attributes {stable_mosaic.version = 11 : i64} {
  func.func @_motion_kernel(%arg0: i32, %arg1: i32, %arg2: i32, %arg3: memref<1x6x256xf32, #tpu.memory_space<vmem>>, %arg4: memref<1x3x256xf32, #tpu.memory_space<vmem>>, %arg5: memref<1x1x6x256xf32, #tpu.memory_space<vmem>>, %arg6: memref<1x1x3x256xf32, #tpu.memory_space<vmem>>, %arg7: memref<4x6xf32, #tpu.memory_space<vmem>>, %arg8: memref<4x6xf32, #tpu.memory_space<vmem>>, %arg9: memref<4x3xf32, #tpu.memory_space<vmem>>, %arg10: memref<4x3xf32, #tpu.memory_space<vmem>>, %arg11: memref<4x1xf32, #tpu.memory_space<vmem>>, %arg12: memref<1x1x8x256xf32, #tpu.memory_space<vmem>>, %arg13: memref<3x256xf32, #tpu.memory_space<vmem>>, %arg14: memref<6x256xf32, #tpu.memory_space<vmem>>) attributes {dimension_semantics = [#tpu.dimension_semantics<parallel>, #tpu.dimension_semantics<parallel>, #tpu.dimension_semantics<arbitrary>], iteration_bounds = array<i64: 2, 2, 6>, scalar_prefetch = 0 : i64, scratch_operands = 2 : i64, tpu.core_type = #tpu.core_type<tc>, window_params = [{transform_indices = @transform_0, window_bounds = array<i64: 1, 6, 256>}, {transform_indices = @transform_1, window_bounds = array<i64: 1, 3, 256>}, {transform_indices = @transform_2, window_bounds = array<i64: 1, 1, 6, 256>}, {transform_indices = @transform_3, window_bounds = array<i64: 1, 1, 3, 256>}, {pipeline_mode = #tpu.pipeline_mode<synchronous>, transform_indices = @transform_4, window_bounds = array<i64: 4, 6>}, {pipeline_mode = #tpu.pipeline_mode<synchronous>, transform_indices = @transform_5, window_bounds = array<i64: 4, 6>}, {pipeline_mode = #tpu.pipeline_mode<synchronous>, transform_indices = @transform_6, window_bounds = array<i64: 4, 3>}, {pipeline_mode = #tpu.pipeline_mode<synchronous>, transform_indices = @transform_7, window_bounds = array<i64: 4, 3>}, {pipeline_mode = #tpu.pipeline_mode<synchronous>, transform_indices = @transform_8, window_bounds = array<i64: 4, 1>}, {transform_indices = @transform_9, window_bounds = array<i64: 1, 1, 8, 256>}]} {
    %c0_i32 = arith.constant 0 : i32
    %0 = arith.cmpi eq, %arg2, %c0_i32 : i32
    %1 = arith.extui %0 : i1 to i32
    %c0_i32_0 = arith.constant 0 : i32
    %2 = arith.cmpi ne, %1, %c0_i32_0 : i32
    scf.if %2 {
      %c0_43 = arith.constant 0 : index
      %c0_44 = arith.constant 0 : index
      %c0_45 = arith.constant 0 : index
      %49 = vector.load %arg4[%c0_43, %c0_44, %c0_45] : memref<1x3x256xf32, #tpu.memory_space<vmem>>, vector<1x3x256xf32>
      %50 = vector.shape_cast %49 : vector<1x3x256xf32> to vector<3x256xf32>
      %c0_46 = arith.constant 0 : index
      %c0_47 = arith.constant 0 : index
      %51 = vector.load %arg13[%c0_46, %c0_47] : memref<3x256xf32, #tpu.memory_space<vmem>>, vector<3x256xf32>
      tpu.vector_store %arg13[%c0_46, %c0_47], %50 {strides = array<i32>} : memref<3x256xf32, #tpu.memory_space<vmem>>, vector<3x256xf32>,
      %c0_48 = arith.constant 0 : index
      %c0_49 = arith.constant 0 : index
      %c0_50 = arith.constant 0 : index
      %52 = vector.load %arg3[%c0_48, %c0_49, %c0_50] : memref<1x6x256xf32, #tpu.memory_space<vmem>>, vector<1x6x256xf32>
      %53 = vector.shape_cast %52 : vector<1x6x256xf32> to vector<6x256xf32>
      %c0_51 = arith.constant 0 : index
      %c0_52 = arith.constant 0 : index
      %54 = vector.load %arg14[%c0_51, %c0_52] : memref<6x256xf32, #tpu.memory_space<vmem>>, vector<6x256xf32>
      tpu.vector_store %arg14[%c0_51, %c0_52], %53 {strides = array<i32>} : memref<6x256xf32, #tpu.memory_space<vmem>>, vector<6x256xf32>,
    } else {
    }
    %c0 = arith.constant 0 : index
    %c0_1 = arith.constant 0 : index
    %c0_2 = arith.constant 0 : index
    %c0_3 = arith.constant 0 : index
    %3 = vector.load %arg5[%c0, %c0_1, %c0_2, %c0_3] : memref<1x1x6x256xf32, #tpu.memory_space<vmem>>, vector<1x1x6x256xf32>
    %4 = vector.shape_cast %3 : vector<1x1x6x256xf32> to vector<6x256xf32>
    %c0_4 = arith.constant 0 : index
    %c0_5 = arith.constant 0 : index
    %c0_6 = arith.constant 0 : index
    %c0_7 = arith.constant 0 : index
    %5 = vector.load %arg6[%c0_4, %c0_5, %c0_6, %c0_7] : memref<1x1x3x256xf32, #tpu.memory_space<vmem>>, vector<1x1x3x256xf32>
    %6 = vector.shape_cast %5 : vector<1x1x3x256xf32> to vector<3x256xf32>
    %c0_8 = arith.constant 0 : index
    %c0_9 = arith.constant 0 : index
    %7 = vector.load %arg14[%c0_8, %c0_9] : memref<6x256xf32, #tpu.memory_space<vmem>>, vector<6x256xf32>
    %c0_10 = arith.constant 0 : index
    %c0_11 = arith.constant 0 : index
    %8 = vector.load %arg13[%c0_10, %c0_11] : memref<3x256xf32, #tpu.memory_space<vmem>>, vector<3x256xf32>
    %c0_12 = arith.constant 0 : index
    %c0_13 = arith.constant 0 : index
    %9 = vector.load %arg7[%c0_12, %c0_13] : memref<4x6xf32, #tpu.memory_space<vmem>>, vector<4x6xf32>
    %cst = arith.constant dense<0.000000e+00> : vector<4x256xf32>
    %10 = tpu.matmul %9, %4, %cst {dimension_numbers = #tpu.dot_dimension_numbers<[1], [0], [0], [1], [0, 0, 1, 1], [], []>} : vector<4x6xf32>, vector<6x256xf32>, vector<4x256xf32> -> vector<4x256xf32>
    %c0_14 = arith.constant 0 : index
    %c0_15 = arith.constant 0 : index
    %11 = vector.load %arg8[%c0_14, %c0_15] : memref<4x6xf32, #tpu.memory_space<vmem>>, vector<4x6xf32>
    %cst_16 = arith.constant dense<0.000000e+00> : vector<4x256xf32>
    %12 = tpu.matmul %11, %7, %cst_16 {dimension_numbers = #tpu.dot_dimension_numbers<[1], [0], [0], [1], [0, 0, 1, 1], [], []>} : vector<4x6xf32>, vector<6x256xf32>, vector<4x256xf32> -> vector<4x256xf32>
    %13 = arith.addf %10, %12 : vector<4x256xf32>
    %c0_17 = arith.constant 0 : index
    %c0_18 = arith.constant 0 : index
    %14 = vector.load %arg9[%c0_17, %c0_18] : memref<4x3xf32, #tpu.memory_space<vmem>>, vector<4x3xf32>
    %cst_19 = arith.constant dense<0.000000e+00> : vector<4x256xf32>
    %15 = tpu.matmul %14, %6, %cst_19 {dimension_numbers = #tpu.dot_dimension_numbers<[1], [0], [0], [1], [0, 0, 1, 1], [], []>} : vector<4x3xf32>, vector<3x256xf32>, vector<4x256xf32> -> vector<4x256xf32>
    %16 = arith.addf %13, %15 : vector<4x256xf32>
    %c0_20 = arith.constant 0 : index
    %c0_21 = arith.constant 0 : index
    %17 = vector.load %arg10[%c0_20, %c0_21] : memref<4x3xf32, #tpu.memory_space<vmem>>, vector<4x3xf32>
    %cst_22 = arith.constant dense<0.000000e+00> : vector<4x256xf32>
    %18 = tpu.matmul %17, %8, %cst_22 {dimension_numbers = #tpu.dot_dimension_numbers<[1], [0], [0], [1], [0, 0, 1, 1], [], []>} : vector<4x3xf32>, vector<3x256xf32>, vector<4x256xf32> -> vector<4x256xf32>
    %19 = arith.addf %16, %18 : vector<4x256xf32>
    %c0_23 = arith.constant 0 : index
    %c0_24 = arith.constant 0 : index
    %20 = vector.load %arg11[%c0_23, %c0_24] : memref<4x1xf32, #tpu.memory_space<vmem>>, vector<4x1xf32>
    %21 = vector.broadcast %20 : vector<4x1xf32> to vector<4x256xf32>
    %22 = arith.addf %19, %21 : vector<4x256xf32>
    %23 = vector.extract_strided_slice %22 {offsets = [0, 0], sizes = [3, 256], strides = [1, 1]} : vector<4x256xf32> to vector<3x256xf32>
    %24 = math.tanh %23 : vector<3x256xf32>
    %25 = vector.extract_strided_slice %22 {offsets = [3, 0], sizes = [1, 256], strides = [1, 1]} : vector<4x256xf32> to vector<1x256xf32>
    %26 = arith.negf %25 : vector<1x256xf32>
    %27 = math.exp %26 : vector<1x256xf32>
    %cst_25 = arith.constant 1.000000e+00 : f32
    %28 = vector.broadcast %cst_25 : f32 to vector<1x256xf32>
    %29 = arith.addf %28, %27 : vector<1x256xf32>
    %30 = arith.divf %28, %29 : vector<1x256xf32>
    %31 = arith.subf %24, %6 : vector<3x256xf32>
    %32 = vector.broadcast %30 : vector<1x256xf32> to vector<3x256xf32>
    %33 = arith.mulf %32, %31 : vector<3x256xf32>
    %34 = arith.addf %6, %33 : vector<3x256xf32>
    %c0_26 = arith.constant 0 : index
    %c0_27 = arith.constant 0 : index
    %c0_28 = arith.constant 0 : index
    %c0_29 = arith.constant 0 : index
    %35 = vector.load %arg12[%c0_26, %c0_27, %c0_28, %c0_29] : memref<1x1x8x256xf32, #tpu.memory_space<vmem>>, vector<1x1x3x256xf32>
    %36 = vector.shape_cast %35 : vector<1x1x3x256xf32> to vector<3x256xf32>
    %37 = vector.shape_cast %24 : vector<3x256xf32> to vector<1x1x3x256xf32>
    tpu.vector_store %arg12[%c0_26, %c0_27, %c0_28, %c0_29], %37 {strides = array<i32>} : memref<1x1x8x256xf32, #tpu.memory_space<vmem>>, vector<1x1x3x256xf32>,
    %c0_30 = arith.constant 0 : index
    %c0_31 = arith.constant 0 : index
    %c3 = arith.constant 3 : index
    %c0_32 = arith.constant 0 : index
    %38 = vector.load %arg12[%c0_30, %c0_31, %c3, %c0_32] : memref<1x1x8x256xf32, #tpu.memory_space<vmem>>, vector<1x1x1x256xf32>
    %39 = vector.shape_cast %38 : vector<1x1x1x256xf32> to vector<1x256xf32>
    %40 = vector.shape_cast %30 : vector<1x256xf32> to vector<1x1x1x256xf32>
    tpu.vector_store %arg12[%c0_30, %c0_31, %c3, %c0_32], %40 {strides = array<i32>} : memref<1x1x8x256xf32, #tpu.memory_space<vmem>>, vector<1x1x1x256xf32>,
    %c0_33 = arith.constant 0 : index
    %c0_34 = arith.constant 0 : index
    %c4 = arith.constant 4 : index
    %c0_35 = arith.constant 0 : index
    %41 = vector.load %arg12[%c0_33, %c0_34, %c4, %c0_35] : memref<1x1x8x256xf32, #tpu.memory_space<vmem>>, vector<1x1x3x256xf32>
    %42 = vector.shape_cast %41 : vector<1x1x3x256xf32> to vector<3x256xf32>
    %43 = vector.shape_cast %34 : vector<3x256xf32> to vector<1x1x3x256xf32>
    tpu.vector_store %arg12[%c0_33, %c0_34, %c4, %c0_35], %43 {strides = array<i32>} : memref<1x1x8x256xf32, #tpu.memory_space<vmem>>, vector<1x1x3x256xf32>,
    %c0_36 = arith.constant 0 : index
    %c0_37 = arith.constant 0 : index
    %c7 = arith.constant 7 : index
    %c0_38 = arith.constant 0 : index
    %44 = vector.load %arg12[%c0_36, %c0_37, %c7, %c0_38] : memref<1x1x8x256xf32, #tpu.memory_space<vmem>>, vector<1x1x1x256xf32>
    %45 = vector.shape_cast %44 : vector<1x1x1x256xf32> to vector<1x256xf32>
    %46 = vector.shape_cast %30 : vector<1x256xf32> to vector<1x1x1x256xf32>
    tpu.vector_store %arg12[%c0_36, %c0_37, %c7, %c0_38], %46 {strides = array<i32>} : memref<1x1x8x256xf32, #tpu.memory_space<vmem>>, vector<1x1x1x256xf32>,
    %c0_39 = arith.constant 0 : index
    %c0_40 = arith.constant 0 : index
    %47 = vector.load %arg13[%c0_39, %c0_40] : memref<3x256xf32, #tpu.memory_space<vmem>>, vector<3x256xf32>
    tpu.vector_store %arg13[%c0_39, %c0_40], %34 {strides = array<i32>} : memref<3x256xf32, #tpu.memory_space<vmem>>, vector<3x256xf32>,
    %c0_41 = arith.constant 0 : index
    %c0_42 = arith.constant 0 : index
    %48 = vector.load %arg14[%c0_41, %c0_42] : memref<6x256xf32, #tpu.memory_space<vmem>>, vector<6x256xf32>
    tpu.vector_store %arg14[%c0_41, %c0_42], %4 {strides = array<i32>} : memref<6x256xf32, #tpu.memory_space<vmem>>, vector<6x256xf32>,
    return
  }
  func.func @transform_0(%arg0: i32, %arg1: i32, %arg2: i32) -> (i32, i32, i32) {
    %c0_i32 = arith.constant 0 : i32
    %c0_i32_0 = arith.constant 0 : i32
    return %arg0, %c0_i32, %arg1 : i32, i32, i32
  }
  func.func @transform_1(%arg0: i32, %arg1: i32, %arg2: i32) -> (i32, i32, i32) {
    %c0_i32 = arith.constant 0 : i32
    %c0_i32_0 = arith.constant 0 : i32
    return %arg0, %c0_i32, %arg1 : i32, i32, i32
  }
  func.func @transform_2(%arg0: i32, %arg1: i32, %arg2: i32) -> (i32, i32, i32, i32) {
    %c1_i32 = arith.constant 1 : i32
    %0 = arith.addi %arg2, %c1_i32 : i32
    %c0_i32 = arith.constant 0 : i32
    %c0_i32_0 = arith.constant 0 : i32
    return %0, %arg0, %c0_i32, %arg1 : i32, i32, i32, i32
  }
  func.func @transform_3(%arg0: i32, %arg1: i32, %arg2: i32) -> (i32, i32, i32, i32) {
    %c1_i32 = arith.constant 1 : i32
    %0 = arith.addi %arg2, %c1_i32 : i32
    %c0_i32 = arith.constant 0 : i32
    %c0_i32_0 = arith.constant 0 : i32
    return %0, %arg0, %c0_i32, %arg1 : i32, i32, i32, i32
  }
  func.func @transform_4(%arg0: i32, %arg1: i32, %arg2: i32) -> (i32, i32) {
    %c0_i32 = arith.constant 0 : i32
    %c0_i32_0 = arith.constant 0 : i32
    %c0_i32_1 = arith.constant 0 : i32
    return %c0_i32, %c0_i32_0 : i32, i32
  }
  func.func @transform_5(%arg0: i32, %arg1: i32, %arg2: i32) -> (i32, i32) {
    %c0_i32 = arith.constant 0 : i32
    %c0_i32_0 = arith.constant 0 : i32
    %c0_i32_1 = arith.constant 0 : i32
    return %c0_i32, %c0_i32_0 : i32, i32
  }
  func.func @transform_6(%arg0: i32, %arg1: i32, %arg2: i32) -> (i32, i32) {
    %c0_i32 = arith.constant 0 : i32
    %c0_i32_0 = arith.constant 0 : i32
    %c0_i32_1 = arith.constant 0 : i32
    return %c0_i32, %c0_i32_0 : i32, i32
  }
  func.func @transform_7(%arg0: i32, %arg1: i32, %arg2: i32) -> (i32, i32) {
    %c0_i32 = arith.constant 0 : i32
    %c0_i32_0 = arith.constant 0 : i32
    %c0_i32_1 = arith.constant 0 : i32
    return %c0_i32, %c0_i32_0 : i32, i32
  }
  func.func @transform_8(%arg0: i32, %arg1: i32, %arg2: i32) -> (i32, i32) {
    %c0_i32 = arith.constant 0 : i32
    %c0_i32_0 = arith.constant 0 : i32
    %c0_i32_1 = arith.constant 0 : i32
    return %c0_i32, %c0_i32_0 : i32, i32
  }
  func.func @transform_9(%arg0: i32, %arg1: i32, %arg2: i32) -> (i32, i32, i32, i32) {
    %c0_i32 = arith.constant 0 : i32
    %c0_i32_0 = arith.constant 0 : i32
    return %arg2, %arg0, %c0_i32, %arg1 : i32, i32, i32, i32
  }
}

</mosaic_0001>

<bundles_post_ra>
// kernel: tpu_custom_call.1
= control target key start
LH: loop header
LB: loop body
LE: loop exit
PB: predicated region body
PF: predicated region fallthrough
CT: control target
= control target key end

     0   :  { %s1667_s0 = inlined_call_operand.vmem [shape: f32[2,6,512], index: 0, kind: input, shape index: {}]   ;;  %s1668_s1 = inlined_call_operand.vmem [shape: f32[2,3,512], index: 1, kind: input, shape index: {}]   ;;  %s1669_s2 = inlined_call_operand.vmem [shape: f32[8,2,6,512], index: 2, kind: input, shape index: {}]   ;;  %s1670_s3 = inlined_call_operand.vmem [shape: f32[8,2,3,512], index: 3, kind: input, shape index: {}]   ;;  %s1671_s4 = inlined_call_operand.vmem [shape: f32[4,6], index: 4, kind: input, shape index: {}]   ;;  %s1672_s5 = inlined_call_operand.vmem [shape: f32[4,6], index: 5, kind: input, shape index: {}]   ;;  %s1673_s6 = inlined_call_operand.vmem [shape: f32[4,3], index: 6, kind: input, shape index: {}]   ;;  %s1674_s7 = inlined_call_operand.vmem [shape: f32[4,3], index: 7, kind: input, shape index: {}]   ;;  %s1675_s8 = inlined_call_operand.vmem [shape: f32[4,1], index: 8, kind: input, shape index: {}]   ;;  %s1676_s9 = inlined_call_operand.hbm [shape: f32[6,2,8,512], index: 9, kind: output, shape index: {}]  }
   0x1   :  { %1695 = sst [smem:[#allocation22_spill]] %s1674_s7 }
   0x2   :  { %1696 = sst [smem:[#allocation23_spill]] %s1676_s9 }
   0x3   :  { %14 = vsyncpa [#allocation5], 0 }
   0x4   :  { %16 = vsyncpa [#allocation5 + $0x1], 0  ;;  %s1442_s30 = smov 0   ;;  %s1444_s10 = smov 0  }
   0x5   :  { %s1446_s11 = smov 0   ;;  %s1448_s12 = smov 0  }
   0x6   :  { %s1450_s13 = smov 0   ;;  %s1452_s14 = smov 0  }
   0x7   :  { %s1454_s15 = smov 0   ;;  %s1456_s16 = smov 0  }
   0x8   :  { %s1458_s17 = smov 0   ;;  %s1460_s18 = smov 0  }
   0x9 LB: > { %1697 = sst [smem:[#allocation7_spill]] %s1350_s30  ;;  %s1121_s19 = sadd.s32 4294967295, %s1386_s18   ;;  %s1386_s18 = sphi %s1460_s18, %s22_s18   ;;  %s1382_s17 = sphi %s1458_s17, %s1733_s17   ;;  %s1378_s16 = sphi %s1456_s16, %s1732_s16   ;;  %s1374_s15 = sphi %s1454_s15, %s1731_s15   ;;  %s1370_s14 = sphi %s1452_s14, %s1730_s14   ;;  %s1366_s13 = sphi %s1450_s13, %s1729_s13   ;;  %s1362_s12 = sphi %s1448_s12, %s1728_s12   ;;  %s1358_s11 = sphi %s1446_s11, %s1727_s11   ;;  %s1354_s10 = sphi %s1444_s10, %s1726_s10   ;;  %s1350_s30 = sphi %s1442_s30, %s1725_s30  }
   0xa   : > { %1698 = sst [smem:[#allocation8_spill]] %s1354_s10  ;;  %s34_s20 = sadd.s32 1, %s1374_s15 }
   0xb   : > { %1699 = sst [smem:[#allocation9_spill]] %s1358_s11  ;;  %p35_p0 = scmp.ge.s32.totalorder %s34_s20, 6 }
   0xc   : > { %1700 = sst [smem:[#allocation10_spill]] %s1370_s14  ;;  %s37_s21 = sadd.s32 1, %s1378_s16 }
   0xd   : > { %1701 = sst [smem:[#allocation11_spill]] %s1374_s15  ;;  %s1122_s22 = sadd.s32 4294967294, %s1386_s18  }
   0xe   : > { %1702 = sst [smem:[#allocation12_spill]] %s1378_s16  ;;  %p287_p1 = scmp.ne.s32.totalorder %s1358_s11, %s1354_s10 }
   0xf   : > { %1703 = sst [smem:[#allocation13_spill]] %s1382_s17  ;;  %s1735_s20 = smov (%p35_p0, %s34_s20), 0 }
  0x10   : > { %1704 = sst [smem:[#allocation14_spill]] %s1386_s18  ;;  %s1737_s21 = smov (!%p35_p0, %s37_s21), %s1378_s16 }
  0x11   : > { %1705 = sst [smem:[#allocation15_spill]] %s1735_s20  ;;  %s41_s23 = sadd.s32 1, %s1382_s17 }
  0x12   : > { %p288_p2 = scmp.eq.s32.totalorder %s1121_s19, 23  ;;  %p39_p3 = scmp.ge.s32.totalorder %s1737_s21, 2 }
  0x13   : > { %p293_p4 = scmp.ne.s32.totalorder %s1354_s10, %s1350_s30  ;;  %p294_p6 = scmp.eq.s32.totalorder %s1122_s22, 23 }
  0x14   : > { %p1504_p5 = por %p288_p2, %p287_p1  ;;  %s1739_s21 = smov (%p39_p3, %s1737_s21), 0 }
  0x15   : > { %1708 = sst [smem:[#allocation17_spill]] %s1739_s21  ;;  %s1741_s23 = smov (!%p39_p3, %s41_s23), %s1382_s17 }
  0x16   : > { %s1706_s24 = scalar_select %p1504_p5, 1, 0 }
  0x17   : > { %p1511_p7 = por %p294_p6, %p293_p4  ;;  %p43_p8 = scmp.ge.s32.totalorder %s1741_s23, 2 }
  0x18   : > { %1707 = sst [smem:[#allocation16_spill]] %s1706_s24  ;;  %p1125_p9 = scmp.ge.s32.totalorder %s1386_s18, 1 }
  0x19   : > { %s1709_s25 = scalar_select %p1511_p7, 1, 0 }
  0x1a   : > { %s270_s26 = ssub.s32 %s1374_s15, %s1735_s20  ;;  %p391_p10 = scmp.lt.s32.totalorder %s1386_s18, 25 }
  0x1b   : > { %1710 = sst [smem:[#allocation18_spill]] %s1709_s25  ;;  %s1743_s23 = smov (%p43_p8, %s1741_s23), 0 }
  0x1c   : > { %1711 = sst [smem:[#allocation19_spill]] %s1743_s23  ;;  %s273_s27 = ssub.s32 %s1378_s16, %s1739_s21 }
  0x1d   : > { %p392_p11 = pnand %p1125_p9, %p391_p10  ;;  %s271_s28 = ssub.s32 %s1382_s17, %s1743_s23 }
  0x1e   : > { %s272_s29 = sor.u32 %s271_s28, %s270_s26  ;;  %s277_s22 = sadd.s32 1, %s1358_s11 }
  0x1f   : > { %s274_s19 = sor.u32 %s273_s27, %s272_s29  ;;  %395 = sbr.rel (%p392_p11) target bundleno = 340 (0x154), region = 56 }
  0x20   : > { %p275_p12 = scmp.eq.s32.totalorder %s274_s19, 0 }
  0x22   : > { %s1527_s30 = scalar_select %p275_p12, %s1358_s11, %s277_s22  }
  0x24   : > { %1712 = sst [smem:[#allocation20_spill]] %s1527_s30 }
  0x26   : > { %s1686_s20 = sand.u32 1, %s1354_s10   ;;  %s1531_s15 = sshll.u32 %s1366_s13, 1 }
  0x27   : > { %1713 = sst [smem:[#allocation21_spill]] %s1531_s15  ;;  %s1126_s23 = sshll.u32 %s1686_s20, 4 }
  0x28   : > { %p469_p13 = scmp.lt.s32.totalorder %s1370_s14, 1  ;;  %p471_p0 = scmp.lt.s32.totalorder %s1531_s15, 3 }
  0x29   : > { %s488_s29 = sadd.s32 1, %s1362_s12  ;;  %s1552_s7 = scalar_lea.vmem [#allocation4], %s1126_s23 }
  0x2a   : > { %s470_s26 = scalar_select %p469_p13, %s1370_s14, 1 }
  0x2b   : > { %s472_s27 = scalar_select %p471_p0, %s1531_s15, 3 }
  0x2c   : > { %s1128_s28 = sshll.u32 %s470_s26, 2  ;;  %p490_p1 = scmp.lt.s32.totalorder %s488_s29, 7 }
  0x2d   : > { %s474_s19 = sadd.s32 %s1128_s28, %s472_s27  ;;  %p1141_p2 = scmp.ne.s32.totalorder %s1362_s12, 0 }
  0x2e   : > { %s1129_s22 = sshll.u32 %s474_s19, 3  ;;  %s1132_s21 = sshll.u32 %s474_s19, 2 }
  0x2f   : > { %s476_s30 = scalar_lea.vmem %s1667_s0, %s1129_s22  ;;  %s486_s25 = scalar_lea.vmem %s1668_s1, %s1132_s21 }
  0x30   : > { %s1745_s29 = smov (!%p490_p1, %s488_s29), 7  ;;  %524 = sbr.rel (%p1141_p2) target bundleno = 55 (0x37), region = 60 }
  0x31   : > { %s1135_s20 = sshll.u32 %s1745_s29, 3  ;;  %v525_v0 = vld [vmem:[%s486_s25] sm:$0x77] (!%p1141_p2)  ;;  %v528_v2 = vld [vmem:[%s476_s30 + $0x8] sm:$0x3f] (!%p1141_p2) }
  0x32   : > { %s499_s18 = sadd.s32 %s1135_s20, %s474_s19  ;;  %v527_v1 = vld [vmem:[%s476_s30] sm:$0x3f] (!%p1141_p2)  ;;  %526 = vst [vmem:[#allocation2] sm:$0x77] (!%p1141_p2), %v525_v0  ;;  %530 = vst [vmem:[#allocation3 + $0x8] sm:$0x3f] (!%p1141_p2), %v528_v2 }
  0x33   : > { %s1136_s9 = sshll.u32 %s499_s18, 3  ;;  %s1140_s24 = sshll.u32 %s499_s18, 2  ;;  %529 = vst [vmem:[#allocation3] sm:$0x3f] (!%p1141_p2), %v527_v1 }
  0x34   : > { %s501_s27 = scalar_lea.vmem %s1669_s2, %s1136_s9  ;;  %s517_s14 = scalar_lea.vmem %s1670_s3, %s1140_s24 }
  0x37 PF: > { %v532_v3 = vld [vmem:[%s501_s27 + $0x8] sm:$0x3f]  ;;  %vm543_vm0 = vcmask 1045504   ;;  %v531_v5 = vld [vmem:[%s501_s27] sm:$0x3f]  ;;  %v1388_v7 = vmov 0.0   ;;  %v894_v34 = vlaneseq }
  0x38   : > { %614 = vmatprep.mubr.f32.mxu1 %v1388_v7  ;;  %v538_v8 = vld [vmem:[%s1672_s5] sm:$0xf]  ;;  %vm539_vm1 = vcmask 48128   ;;  %vm708_vm2 = vcmask 1042432   ;;  %777 = vmatprep.mubr.f32.mxu0 %v1388_v7  ;;  %vm704_vm3 = vcmask 23552   ;;  %v1389_v15 = vmov 0  }
  0x39   : > { %v535_v4 = vld [vmem:[#allocation3 + $0x8] sm:$0x3f]  ;;  %v1560_v9 = vld [vmem:[%s517_s14] sm:$0x77]  ;;  %1261 = vset.pattern.permute.xlu0 %v1389_v15  ;;  %s1714_s21 = sld [smem:[#allocation22_spill]]  ;;  %s1715_s23 = sld [smem:[#allocation10_spill]] }
  0x3a   : > { %1142 = vmatprep.subr.msk.mxu1 %vm543_vm0, %v535_v4  ;;  %948 = vst [vmem:[#allocation3 + $0x8] sm:$0x3f] %v532_v3  ;;  %v534_v6 = vld [vmem:[#allocation3] sm:$0x3f]  ;;  %v1565_v10 = vcombine.high %v1560_v9, %v1560_v9  ;;  %v536_v11 = vld [vmem:[#allocation2] sm:$0x77] }
  0x3b   : > { %1143 = vmatpush1.msk.msra.mxu1 %vm543_vm0, %v534_v6  ;;  %947 = vst [vmem:[#allocation3] sm:$0x3f] %v531_v5  ;;  %v701_v12 = vld [vmem:[%s1673_s6] sm:$0xf]  ;;  %v788_v13 = vcombine.high %v536_v11, %v536_v11  ;;  %s1716_s24 = sld [smem:[#allocation21_spill]]  ;;  %v895_v38 = vshrl.u32 %v894_v34, 7 }
  0x3c   : > { %1144 = vmatmul.mubr.msk.f32.vlgmr.msra.gmra.mrb[0].mxu1 %vm539_vm1, %v538_v8  ;;  %1145 = vmatprep.subr.msk.mxu1 %vm543_vm0, %v532_v3  ;;  %v869_v14 = vld [vmem:[%s1675_s8] sm:$0xf]  ;;  %v1390_v36 = vmov 1966171168   ;;  %s1161_s19 = sshll.u32 %s1362_s12, 3  ;;  %s1717_s13 = sld [smem:[#allocation8_spill]] }
  0x3d   : > { %1146 = vmatpush1.msk.msra.mxu1 %vm543_vm0, %v531_v5  ;;  %694 = vmatprep.mubr.f32.mxu1 %v1388_v7  ;;  %v537_v16 = vld [vmem:[%s1671_s4] sm:$0xf]  ;;  %v915_v37 = vunpack.c.l.s4 %v1390_v36  ;;  %v896_v40 = vsub.s32 3, %v895_v38  ;;  %s968_s27 = sshll.u32 %s1552_s7, 4  ;;  %vm933_vm4 = vcmp.lt.s32.totalorder %v894_v34, 256  ;;  %s1719_s10 = sld [smem:[#allocation23_spill]]  ;;  %s1605_s27 = int_to_ptr.vmem [resolvable:$true] %s968_s27 }
  0x3e   : > { %1148 = vmatprep.subr.msk.mxu0 %vm708_vm2, %v1565_v10  ;;  %872 = vperm.xlu0 %1261, %v869_v14   ;;  %s1276_s15 = scalar_lea.vmem %s1605_s27, 256  ;;  %s1391_s16 = smov [#allocation4]  }
  0x3f   : > { %1149 = vmatpush1.msk.msra.mxu0 %vm708_vm2, %v1560_v9  ;;  %v786_v17 = vld [vmem:[%s1714_s21] sm:$0xf]  ;;  %v916_v39 = vunpack.c.0.s8 %v915_v37  ;;  %s1160_s25 = sshll.u32 %s1715_s23, 2  ;;  %p1277_p3 = scmp.ne.s32.totalorder %s1605_s27, %s1276_s15 }
  0x40   : > { %1150 = vmatmul.mubr.msk.f32.vlgmr.msra.gmra.mrb[0].mxu0 %vm704_vm3, %v701_v12  ;;  %1151 = vmatprep.subr.msk.mxu0 %vm708_vm2, %v788_v13  ;;  %s1280_s17 = sshll.u32 %s1391_s16, 4  ;;  %s1281_s17 = int_to_ptr.vmem [resolvable:$false] %s1280_s17 }
  0x41   : > { %1152 = vmatpush1.msk.msra.mxu0 %vm708_vm2, %v536_v11  ;;  %860 = vmatprep.mubr.f32.mxu0 %v1388_v7  ;;  %v919_v42 = vsub.s32 %v916_v39, %v895_v38  ;;  %s962_s29 = sadd.s32 %s1160_s25, %s1716_s24  ;;  %p1278_p4 = pnand %p1277_p3, %p1504_p5 }
  0x42   : > { %s964_s22 = sadd.s32 %s1161_s19, %s962_s29  ;;  %s1721_s11 = sand.u32 1, %s1717_s13  }
  0x43   : > { %s1162_s26 = sshll.u32 %s964_s22, 7  ;;  %s1720_s20 = smov %s1719_s10 }
  0x44   : > { %1147 = vmatmul.mubr.msk.f32.vlgmr.msra.gmra.mrb[0].mxu1 %vm539_vm1, %v537_v16  ;;  %s1603_s30 = scalar_lea.hbm %s1719_s10, %s1162_s26  ;;  %s950_s14 = scalar_lea.sflag [#allocation5], %s1721_s11 }
  0x45   : > { %p1279_p6 = pneg %p1278_p4  ;;  %s1282_s18 = scalar_lea.vmem %s1281_s17, 512 }
  0x46   : > { %p1283_p8 = scmp.lt.s32.totalorder %s1605_s27, %s1281_s17  ;;  %p1284_p9 = scmp.lt.s32.totalorder %s1282_s18, %s1276_s15 }
  0x48   : > { %1153 = vmatmul.mubr.msk.f32.vlgmr.msra.gmra.mrb[0].mxu0 %vm704_vm3, %v786_v17  ;;  %p1285_p10 = por %p1284_p9, %p1283_p8 }
  0x4a   : > { %p1286_p11 = pnand %p1285_p10, %p1279_p6 }
  0xbd   : > { %v873_v21 = vpop.permute.xlu0 %872 }
 0x117   : > { %v696_v18 = vpop.f32.mrb[0].mxu1 }
 0x118   : > { %v698_v19 = vpop.f32.mrb[1].mxu1 }
 0x11b   : > { %v862_v20 = vpop.f32.mrb[0].mxu0 }
 0x11c   : > { %v1165_v22 = vadd.f32 %v862_v20, %v696_v18  ;;  %v864_v23 = vpop.f32.mrb[1].mxu0 }
 0x11d   : > { %v1166_v24 = vadd.f32 %v864_v23, %v698_v19 }
 0x11e   : > { %v875_v25 = vadd.f32 %v1165_v22, %v873_v21 }
 0x11f   : > { %v876_v26 = vadd.f32 %v1166_v24, %v873_v21 }
 0x120   : > { %1264 = vtanh.f32 %v875_v25  ;;  %v1154_v27 = vmul.f32 -1.442695, %v875_v25 }
 0x121   : > { %1266 = vtanh.f32 %v876_v26  ;;  %v1155_v28 = vmul.f32 -1.442695, %v876_v26 }
 0x122   : > { %1268 = vpow2.f32 %v1154_v27 }
 0x123   : > { %1270 = vpow2.f32 %v1155_v28 }
 0x12a   : > { %v1265_v29 = vpop.eup %1264 }
 0x12b   : > { %v1267_v30 = vpop.eup %1266  ;;  %909 = vst [vmem:[%s1552_s7] sm:$0x7] %v1265_v29  ;;  %v892_v44 = vsub.f32 %v1265_v29, %v1560_v9 }
 0x12c   : > { %v1269_v31 = vpop.eup %1268  ;;  %910 = vst [vmem:[%s1552_s7 + $0x8] sm:$0x7] %v1267_v30  ;;  %v893_v46 = vsub.f32 %v1267_v30, %v1565_v10 }
 0x12d   : > { %v1271_v32 = vpop.eup %1270  ;;  %v885_v33 = vadd.f32 1.0, %v1269_v31 }
 0x12e   : > { %v886_v35 = vadd.f32 1.0, %v1271_v32 }
 0x12f   : > { %1272 = vrcp.f32 %v885_v33 }
 0x130   : > { %1274 = vrcp.f32 %v886_v35 }
 0x139   : > { %v1273_v41 = vpop.eup %1272 }
 0x13a   : > { %v1275_v43 = vpop.eup %1274  ;;  %v897_v45 = vrot.slane %v1273_v41, %v896_v40 }
 0x13b   : > { %v901_v47 = vrot.slane %v1275_v43, %v896_v40  ;;  %v913_v48 = vcombine.low %v1273_v41, %v1275_v43 }
 0x13c   : > { %v902_v49 = vmul.f32 %v897_v45, %v892_v44 }
 0x13d   : > { %v903_v50 = vmul.f32 %v901_v47, %v893_v46  ;;  %v920_v51 = vrot.slane %v913_v48, %v919_v42 }
 0x13f   : > { %v906_v52 = vcombine.low %v902_v49, %v903_v50  ;;  %v921_v53 = vcombine.high %v920_v51, %v920_v51 }
 0x141   : > { %v908_v54 = vadd.f32 %v906_v52, %v1560_v9  ;;  %v928_v55 = vrot.slane %v921_v53, %v919_v42 }
 0x143   : > { %946 = vst [vmem:[#allocation2] sm:$0x77] %v908_v54  ;;  %942 = vst [vmem:[%s1552_s7 + $0x8] sm:$0x70] %v908_v54  ;;  %v929_v56 = vcombine.high %v928_v55, %v928_v55  ;;  %v939_v57 = vcombine.low %v908_v54, %v908_v54 }
 0x145   : > { %1156 = vst.msk [vmem:[%s1552_s7 + $0x3] ss:$8 sm:$0x3] %vm933_vm4, %v929_v56  ;;  %941 = vst [vmem:[%s1552_s7] sm:$0x70] %v939_v57 }
 0x146   : > { %1157 = vst.msk [vmem:[%s1552_s7 + $0x7] ss:$8 sm:$0x3] %vm933_vm4, %v929_v56 }
 0x147   : > { %1289 = shalt.err (!%p1286_p11)
}
 0x148   : > { %s1290_s7 = scalar_lea.hbm %s1603_s30, 256  ;;  %s1294_s24 = scalar_lea.hbm %s1720_s20, 6144 }
 0x149   : > { %p1291_p12 = scmp.ne.s32.totalorder %s1603_s30, %s1290_s7  ;;  %p1295_p1 = scmp.lt.u32.totalorder %s1603_s30, %s1720_s20 }
 0x14a   : > { %p1296_p2 = scmp.lt.u32.totalorder %s1294_s24, %s1290_s7  ;;  %p1298_p4 = scmp.lt.u32.totalorder %s1290_s7, %s1603_s30 }
 0x14b   : > { %p1292_p13 = pnand %p1291_p12, %p1504_p5 }
 0x14c   : > { %p1297_p3 = por %p1296_p2, %p1295_p1 }
 0x14d   : > { %p1293_p0 = pneg %p1292_p13 }
 0x14e   : > { %p1299_p6 = por %p1298_p4, %p1297_p3 }
 0x150   : > { %p1300_p8 = pnand %p1299_p6, %p1293_p0 }
 0x152   : > { %1303 = shalt.err (!%p1300_p8)
}
 0x153   : > { %1171 = dma.vmem_to_hbm [thread:$0]  (%p1504_p5), %s1605_s27, 256, %s1603_s30, %s950_s14  }
 0x154 PF: > { %s1722_s19 = sld [smem:[#allocation14_spill]]  ;;  %s1723_s22 = sld [smem:[#allocation7_spill]] }
 0x15a   : > { %p1177_p9 = scmp.ge.s32.totalorder %s1722_s19, 2  ;;  %s980_s26 = sand.u32 1, %s1723_s22  }
 0x15b   : > { %s981_s12 = scalar_lea.sflag [#allocation5], %s980_s26 }
 0x15c   : > { %p1174_p10 = pnand %p1177_p9, %p1511_p7 }
 0x15e   : > { %1345 = dma.done.wait (!%p1174_p10), %s981_s12, 256  }
 0x15f   : > { %1347 = vsyncadd (!%p1174_p10), %s981_s12, 4294967040  ;;  %s22_s18 = sadd.s32 1, %s1722_s19   ;;  %s1725_s30 = sld [smem:[#allocation8_spill]] }
 0x160   : > { %p19_p11 = scmp.ge.s32.totalorder %s22_s18, 26   ;;  %s1726_s10 = sld [smem:[#allocation9_spill]] }
 0x161   : > { %s1727_s11 = sld [smem:[#allocation20_spill]]  ;;  %s1728_s12 = sld [smem:[#allocation11_spill]] }
 0x162   : > { %s1729_s13 = sld [smem:[#allocation12_spill]]  ;;  %s1730_s14 = sld [smem:[#allocation13_spill]] }
 0x163   : > { %s1731_s15 = sld [smem:[#allocation15_spill]]  ;;  %s1732_s16 = sld [smem:[#allocation17_spill]] }
 0x164   : > { %s1733_s17 = sld [smem:[#allocation19_spill]]  ;;  %21 = sbr.rel (!%p19_p11) target bundleno = 9 (0x9), region = 106 }
 0x16b   :  { %986 = vsyncpa [#allocation5], 1 }
 0x16c   :  { %988 = vsyncpa [#allocation5 + $0x1], 1 }

</bundles_post_ra>
